<compile_context>
chip_gen: v7x
topology: tpu7x:2x2x1
jax: 0.10.0
libtpu: 0.0.40
codegen_flags: <defaults>
</compile_context>

<pallas_src>
import math
import functools

import numpy as np
import jax
import jax.numpy as jnp
from jax.experimental import pallas as pl
from jax.experimental.pallas import tpu as pltpu


# ----------------------------------------------------------------------------
# helpers
# ----------------------------------------------------------------------------
def _pick_tile(dim, cap, align):
    """Largest tile <= cap that is a multiple of `align` and divides `dim`,
    falling back to the full dimension (always BlockSpec-legal)."""
    if dim <= cap:
        return dim
    t = (cap // align) * align
    while t >= align:
        if dim % t == 0:
            return t
        t -= align
    return dim


def rotate_half_matrix(head_dim):
    # rotate_half(x)[j]        = -x[2j+1]   for j <  Dh/2
    # rotate_half(x)[Dh/2 + i] =  x[2i]     for i <  Dh/2
    half = head_dim // 2
    R = np.zeros((head_dim, head_dim), np.float32)
    for j in range(half):
        R[2 * j + 1, j] = -1.0
        R[2 * j, half + j] = 1.0
    return jnp.asarray(R)


# ----------------------------------------------------------------------------
# Tiled projection matmul: (M, K) @ (K, N) with f32 VMEM accumulator.
# ----------------------------------------------------------------------------
def _matmul_kernel(x_ref, w_ref, o_ref, acc_ref):
    @pl.when(pl.program_id(2) == 0)
    def _init():
        acc_ref[...] = jnp.zeros(acc_ref.shape, acc_ref.dtype)

    acc_ref[...] += jnp.dot(x_ref[...], w_ref[...],
                            preferred_element_type=jnp.float32)

    @pl.when(pl.program_id(2) == pl.num_programs(2) - 1)
    def _store():
        o_ref[...] = acc_ref[...].astype(o_ref.dtype)


def pallas_matmul(x, w, tm=256, tn=256, tk=512):
    M, K = x.shape
    K2, N = w.shape
    assert K == K2
    tm = _pick_tile(M, tm, 8)
    tn = _pick_tile(N, tn, 128)
    tk = _pick_tile(K, tk, 128)
    grid = (M // tm, N // tn, K // tk)
    return pl.pallas_call(
        _matmul_kernel,
        out_shape=jax.ShapeDtypeStruct((M, N), x.dtype),
        grid=grid,
        in_specs=[
            pl.BlockSpec((tm, tk), lambda i, j, k: (i, k)),
            pl.BlockSpec((tk, tn), lambda i, j, k: (k, j)),
        ],
        out_specs=pl.BlockSpec((tm, tn), lambda i, j, k: (i, j)),
        scratch_shapes=[pltpu.VMEM((tm, tn), jnp.float32)],
        compiler_params=pltpu.CompilerParams(
            dimension_semantics=("parallel", "parallel", "arbitrary")),
    )(x, w)


# ----------------------------------------------------------------------------
# Rotary pre-kernel: out = (x * cos + rotate_half(x) * sin) * scale
# Applied once per tensor (q gets scale = 1/sqrt(Dh) folded in, k scale = 1).
# ----------------------------------------------------------------------------
def _rotary_kernel(x_ref, cos_ref, sin_ref, rot_ref, o_ref, *, scale):
    x = x_ref[0].astype(jnp.float32)                          # (T, Dh)
    rot = jnp.dot(x, rot_ref[...], preferred_element_type=jnp.float32)
    o_ref[0] = ((x * cos_ref[...] + rot * sin_ref[...]) * scale).astype(o_ref.dtype)


def pallas_rotary(x, cos_rep, sin_rep, rot_mat, scale):
    N, S, Dh = x.shape
    T = _pick_tile(S, 512, 8)
    kern = functools.partial(_rotary_kernel, scale=scale)
    return pl.pallas_call(
        kern,
        out_shape=jax.ShapeDtypeStruct((N, S, Dh), x.dtype),
        grid=(N, S // T),
        in_specs=[
            pl.BlockSpec((1, T, Dh), lambda n, s: (n, s, 0)),
            pl.BlockSpec((T, Dh), lambda n, s: (s, 0)),
            pl.BlockSpec((T, Dh), lambda n, s: (s, 0)),
            pl.BlockSpec((Dh, Dh), lambda n, s: (0, 0)),
        ],
        out_specs=pl.BlockSpec((1, T, Dh), lambda n, s: (n, s, 0)),
        compiler_params=pltpu.CompilerParams(
            dimension_semantics=("parallel", "parallel")),
    )(x, cos_rep, sin_rep, rot_mat)


# ----------------------------------------------------------------------------
# Flash attention kernel (online softmax, causal, GQA via index_map).
# q is pre-rotated and pre-scaled; k is pre-rotated.
# ----------------------------------------------------------------------------
def _flash_kernel(q_ref, k_ref, v_ref, o_ref, m_sc, l_sc, acc_sc, *, tq, tk):
    qi = pl.program_id(1)
    ki = pl.program_id(2)

    @pl.when(ki == 0)
    def _init():
        m_sc[...] = jnp.full(m_sc.shape, -jnp.inf, m_sc.dtype)
        l_sc[...] = jnp.zeros(l_sc.shape, l_sc.dtype)
        acc_sc[...] = jnp.zeros(acc_sc.shape, acc_sc.dtype)

    def _accumulate(masked):
        q = q_ref[0]                                   # (tq, Dh), input dtype
        k = k_ref[0]                                   # (tk, Dh)
        s = jax.lax.dot_general(q, k, (((1,), (1,)), ((), ())),
                                preferred_element_type=jnp.float32)  # (tq, tk)
        if masked:
            # Only the diagonal tile ever needs the causal mask (tq == tk).
            row = qi * tq + jax.lax.broadcasted_iota(jnp.int32, (tq, tk), 0)
            col = ki * tk + jax.lax.broadcasted_iota(jnp.int32, (tq, tk), 1)
            s = jnp.where(col > row, -jnp.inf, s)

        m_prev = m_sc[...]                             # (tq, 1)
        m_new = jnp.maximum(m_prev, jnp.max(s, axis=-1, keepdims=True))
        alpha = jnp.exp(m_prev - m_new)
        p = jnp.exp(s - m_new)                         # (tq, tk) f32
        l_sc[...] = alpha * l_sc[...] + jnp.sum(p, axis=-1, keepdims=True)
        acc_sc[...] = alpha * acc_sc[...] + jnp.dot(
            p.astype(v_ref.dtype), v_ref[0],
            preferred_element_type=jnp.float32)
        m_sc[...] = m_new

    # Off-diagonal lower-triangle tiles: mask-free hot path (no iota / where).
    @pl.when(ki < qi)
    def _off_diag():
        _accumulate(masked=False)

    # Diagonal tile is the last contributing tile for this q block: apply the
    # causal mask here and finalize with one deferred 1/l normalization.
    # Fully-masked tiles (ki > qi) do no compute and (via the clamped kv
    # index_map) no DMA.
    @pl.when(ki == qi)
    def _diag():
        _accumulate(masked=True)
        inv = pl.reciprocal(l_sc[...], approx=False)
        o_ref[0] = (acc_sc[...] * inv).astype(o_ref.dtype)


def pallas_flash_attention(q, k, v, n_heads, n_kv_heads, tile=256):
    BH, S, Dh = q.shape
    assert BH % n_heads == 0
    B = BH // n_heads
    n_rep = n_heads // n_kv_heads
    assert k.shape == (B * n_kv_heads, S, Dh)
    assert v.shape == (B * n_kv_heads, S, Dh)

    T = _pick_tile(S, tile, 8)
    n_tiles = S // T
    H, Hkv = n_heads, n_kv_heads

    def q_map(bh, qi, ki):
        return (bh, qi, 0)

    def kv_map(bh, qi, ki):
        # GQA: query head (bh % H) reads kv head (bh % H) // n_rep of batch bh // H.
        # Clamp the kv tile to the diagonal: for skipped (fully masked) tiles
        # the block index is unchanged, so the pipeline issues no DMA.
        return ((bh // H) * Hkv + (bh % H) // n_rep, jnp.minimum(ki, qi), 0)

    kern = functools.partial(_flash_kernel, tq=T, tk=T)
    return pl.pallas_call(
        kern,
        out_shape=jax.ShapeDtypeStruct((BH, S, Dh), q.dtype),
        grid=(BH, n_tiles, n_tiles),
        in_specs=[
            pl.BlockSpec((1, T, Dh), q_map),
            pl.BlockSpec((1, T, Dh), kv_map),
            pl.BlockSpec((1, T, Dh), kv_map),
        ],
        out_specs=pl.BlockSpec((1, T, Dh), q_map),
        scratch_shapes=[
            pltpu.VMEM((T, 1), jnp.float32),    # running max m
            pltpu.VMEM((T, 1), jnp.float32),    # running sum l
            pltpu.VMEM((T, Dh), jnp.float32),   # output accumulator
        ],
        compiler_params=pltpu.CompilerParams(
            dimension_semantics=("parallel", "parallel", "arbitrary")),
    )(q, k, v)


# ----------------------------------------------------------------------------
# Full module forward
# ----------------------------------------------------------------------------
def attention_forward(x, pos_cos, pos_sin, wq, wk, wv, wo, n_heads, n_kv_heads):
    B, S, D = x.shape
    head_dim = D // n_heads
    Dq = n_heads * head_dim
    Dkv = n_kv_heads * head_dim

    # Fused QKV projection: the activation is read from HBM once.
    w_qkv = jnp.concatenate([wq, wk, wv], axis=1)
    qkv = pallas_matmul(x.reshape(B * S, D), w_qkv)
    xq = qkv[:, :Dq].reshape(B, S, n_heads, head_dim)
    xk = qkv[:, Dq:Dq + Dkv].reshape(B, S, n_kv_heads, head_dim)
    xv = qkv[:, Dq + Dkv:].reshape(B, S, n_kv_heads, head_dim)

    # (B, S, H, Dh) -> (B*H, S, Dh) slabs.
    q = xq.transpose(0, 2, 1, 3).reshape(B * n_heads, S, head_dim)
    k = xk.transpose(0, 2, 1, 3).reshape(B * n_kv_heads, S, head_dim)
    v = xv.transpose(0, 2, 1, 3).reshape(B * n_kv_heads, S, head_dim)
    # TODO(synk): reading q/k/v directly from the (B, S, H, Dh) layout with 4-D
    # BlockSpecs would remove these HBM transposes, but a per-head sublane
    # block of 1 violates (8,128) tiling for small H, so they stay in XLA.

    cos_rep = jnp.repeat(pos_cos, 2, axis=-1)   # torch repeat_interleave(2, -1)
    sin_rep = jnp.repeat(pos_sin, 2, axis=-1)
    R = rotate_half_matrix(head_dim)

    scale = 1.0 / math.sqrt(head_dim)
    # Rotary applied once per tensor; 1/sqrt(Dh) folded into q so the score
    # matrix is never rescaled.
    q = pallas_rotary(q, cos_rep, sin_rep, R, scale=scale)
    k = pallas_rotary(k, cos_rep, sin_rep, R, scale=1.0)

    # GQA handled inside the flash kernel by index_map -- no repeat_kv copies.
    o = pallas_flash_attention(q, k, v, n_heads, n_kv_heads)

    o = (o.reshape(B, n_heads, S, head_dim)
           .transpose(0, 2, 1, 3)
           .reshape(B * S, n_heads * head_dim))
    out = pallas_matmul(o, wo).reshape(B, S, D)
    # attn_dropout / resid_dropout are identity at eval (dropout disabled).
    # TODO(synk): kv_cache decode path (seqlen==1 incremental cache) not implemented.
    return out


# ----------------------------------------------------------------------------
# Pure-JAX reference (mirrors the PyTorch forward) for a correctness check.
# ----------------------------------------------------------------------------
def reference_forward(x, pos_cos, pos_sin, wq, wk, wv, wo, n_heads, n_kv_heads):
    B, S, D = x.shape
    Dh = D // n_heads
    n_rep = n_heads // n_kv_heads
    xq = (x @ wq).reshape(B, S, n_heads, Dh)
    xk = (x @ wk).reshape(B, S, n_kv_heads, Dh)
    xv = (x @ wv).reshape(B, S, n_kv_heads, Dh)

    cos = jnp.repeat(pos_cos, 2, axis=-1)[None, :, None, :]
    sin = jnp.repeat(pos_sin, 2, axis=-1)[None, :, None, :]

    def rot_half(t):
        odd, even = t[..., ::2], t[..., 1::2]
        return jnp.concatenate([-even, odd], axis=-1)

    xq = xq * cos + rot_half(xq) * sin
    xk = xk * cos + rot_half(xk) * sin

    xk = jnp.repeat(xk, n_rep, axis=2)
    xv = jnp.repeat(xv, n_rep, axis=2)

    q = jnp.transpose(xq, (0, 2, 1, 3))
    k = jnp.transpose(xk, (0, 2, 1, 3))
    v = jnp.transpose(xv, (0, 2, 1, 3))

    s = jnp.einsum("bhqd,bhkd->bhqk", q, k) / math.sqrt(Dh)
    mask = jnp.triu(jnp.full((S, S), -jnp.inf), k=1)
    s = s + mask[None, None]
    p = jax.nn.softmax(s, axis=-1)
    o = jnp.einsum("bhqk,bhkd->bhqd", p, v)
    o = jnp.transpose(o, (0, 2, 1, 3)).reshape(B, S, n_heads * Dh)
    return o @ wo


if __name__ == "__main__":
    # Small config: dim=32, n_heads=4, n_kv_heads=2 -> head_dim=8, n_rep=2
    B, S, D = 2, 8, 32
    n_heads, n_kv_heads = 4, 2
    head_dim = D // n_heads

    key = jax.random.PRNGKey(0)
    kx, kq, kk, kv, ko = jax.random.split(key, 5)

    x = jax.random.normal(kx, (B, S, D), jnp.float32)
    # nn.Linear weights are (out, in); store transposed (in, out) for x @ W.
    wq = jax.random.normal(kq, (D, n_heads * head_dim), jnp.float32) * (1.0 / math.sqrt(D))
    wk = jax.random.normal(kk, (D, n_kv_heads * head_dim), jnp.float32) * (1.0 / math.sqrt(D))
    wv = jax.random.normal(kv, (D, n_kv_heads * head_dim), jnp.float32) * (1.0 / math.sqrt(D))
    wo = jax.random.normal(ko, (n_heads * head_dim, D), jnp.float32) * (1.0 / math.sqrt(D))

    # rotary tables, shape (S, head_dim // 2)
    pos = jnp.arange(S, dtype=jnp.float32)
    freqs = 1.0 / (10000.0 ** (jnp.arange(0, head_dim, 2, dtype=jnp.float32) / head_dim))
    ang = jnp.outer(pos, freqs)
    pos_cos, pos_sin = jnp.cos(ang), jnp.sin(ang)

    out = attention_forward(x, pos_cos, pos_sin, wq, wk, wv, wo, n_heads, n_kv_heads)
    out = jax.block_until_ready(out)

    ref = reference_forward(x, pos_cos, pos_sin, wq, wk, wv, wo, n_heads, n_kv_heads)
    np.testing.assert_allclose(np.asarray(out), np.asarray(ref), rtol=1e-4, atol=1e-4)

    print("KERNEL_OK")
</pallas_src>

<mosaic_0001>
module attributes {stable_mosaic.version = 11 : i64} {
  func.func @_matmul_kernel(%arg0: i32, %arg1: i32, %arg2: i32, %arg3: memref<16x32xf32, #tpu.memory_space<vmem>>, %arg4: memref<32x64xf32, #tpu.memory_space<vmem>>, %arg5: memref<16x64xf32, #tpu.memory_space<vmem>>, %arg6: memref<16x64xf32, #tpu.memory_space<vmem>>) attributes {dimension_semantics = [#tpu.dimension_semantics<parallel>, #tpu.dimension_semantics<parallel>, #tpu.dimension_semantics<arbitrary>], iteration_bounds = array<i64: 1, 1, 1>, scalar_prefetch = 0 : i64, scratch_operands = 1 : i64, tpu.core_type = #tpu.core_type<tc>, window_params = [{transform_indices = @transform_0, window_bounds = array<i64: 16, 32>}, {transform_indices = @transform_1, window_bounds = array<i64: 32, 64>}, {transform_indices = @transform_2, window_bounds = array<i64: 16, 64>}]} {
    %c0_i32 = arith.constant 0 : i32
    %0 = arith.cmpi eq, %arg2, %c0_i32 : i32
    %1 = arith.extui %0 : i1 to i32
    %c0_i32_0 = arith.constant 0 : i32
    %2 = arith.cmpi ne, %1, %c0_i32_0 : i32
    scf.if %2 {
      %cst_10 = arith.constant 0.000000e+00 : f32
      %12 = vector.broadcast %cst_10 : f32 to vector<16x64xf32>
      %c0_11 = arith.constant 0 : index
      %c0_12 = arith.constant 0 : index
      %13 = vector.load %arg6[%c0_11, %c0_12] : memref<16x64xf32, #tpu.memory_space<vmem>>, vector<16x64xf32>
      tpu.vector_store %arg6[%c0_11, %c0_12], %12 {strides = array<i32>} : memref<16x64xf32, #tpu.memory_space<vmem>>, vector<16x64xf32>,
    } else {
    }
    %c0 = arith.constant 0 : index
    %c0_1 = arith.constant 0 : index
    %3 = vector.load %arg6[%c0, %c0_1] : memref<16x64xf32, #tpu.memory_space<vmem>>, vector<16x64xf32>
    %c0_2 = arith.constant 0 : index
    %c0_3 = arith.constant 0 : index
    %4 = vector.load %arg3[%c0_2, %c0_3] : memref<16x32xf32, #tpu.memory_space<vmem>>, vector<16x32xf32>
    %c0_4 = arith.constant 0 : index
    %c0_5 = arith.constant 0 : index
    %5 = vector.load %arg4[%c0_4, %c0_5] : memref<32x64xf32, #tpu.memory_space<vmem>>, vector<32x64xf32>
    %cst = arith.constant dense<0.000000e+00> : vector<16x64xf32>
    %6 = tpu.matmul %4, %5, %cst {dimension_numbers = #tpu.dot_dimension_numbers<[1], [0], [0], [1], [0, 0, 1, 1], [], []>} : vector<16x32xf32>, vector<32x64xf32>, vector<16x64xf32> -> vector<16x64xf32>
    %7 = arith.addf %3, %6 : vector<16x64xf32>
    %c0_6 = arith.constant 0 : index
    %c0_7 = arith.constant 0 : index
    %8 = vector.load %arg6[%c0_6, %c0_7] : memref<16x64xf32, #tpu.memory_space<vmem>>, vector<16x64xf32>
    tpu.vector_store %arg6[%c0_6, %c0_7], %7 {strides = array<i32>} : memref<16x64xf32, #tpu.memory_space<vmem>>, vector<16x64xf32>,
    %c0_i32_8 = arith.constant 0 : i32
    %9 = arith.cmpi eq, %arg2, %c0_i32_8 : i32
    %10 = arith.extui %9 : i1 to i32
    %c0_i32_9 = arith.constant 0 : i32
    %11 = arith.cmpi ne, %10, %c0_i32_9 : i32
    scf.if %11 {
      %c0_10 = arith.constant 0 : index
      %c0_11 = arith.constant 0 : index
      %12 = vector.load %arg6[%c0_10, %c0_11] : memref<16x64xf32, #tpu.memory_space<vmem>>, vector<16x64xf32>
      %c0_12 = arith.constant 0 : index
      %c0_13 = arith.constant 0 : index
      %13 = vector.load %arg5[%c0_12, %c0_13] : memref<16x64xf32, #tpu.memory_space<vmem>>, vector<16x64xf32>
      tpu.vector_store %arg5[%c0_12, %c0_13], %12 {strides = array<i32>} : memref<16x64xf32, #tpu.memory_space<vmem>>, vector<16x64xf32>,
    } else {
    }
    return
  }
  func.func @transform_0(%arg0: i32, %arg1: i32, %arg2: i32) -> (i32, i32) {
    %c0_i32 = arith.constant 0 : i32
    return %arg0, %arg2 : i32, i32
  }
  func.func @transform_1(%arg0: i32, %arg1: i32, %arg2: i32) -> (i32, i32) {
    %c0_i32 = arith.constant 0 : i32
    return %arg2, %arg1 : i32, i32
  }
  func.func @transform_2(%arg0: i32, %arg1: i32, %arg2: i32) -> (i32, i32) {
    %c0_i32 = arith.constant 0 : i32
    return %arg0, %arg1 : i32, i32
  }
}

</mosaic_0001>

<bundles_post_ra>
// kernel: tpu_custom_call.1
= control target key start
LH: loop header
LB: loop body
LE: loop exit
PB: predicated region body
PF: predicated region fallthrough
CT: control target
= control target key end

     0   :  { %7 = vsyncpa [#allocation4], 0  ;;  %s344_s0 = inlined_call_operand.hbm [shape: f32[16,32], index: 0, kind: input, shape index: {}]   ;;  %s345_s1 = inlined_call_operand.hbm [shape: f32[32,64], index: 1, kind: input, shape index: {}]   ;;  %s346_s2 = inlined_call_operand.hbm [shape: f32[16,64], index: 2, kind: output, shape index: {}]  }
   0x1   :  { %8 = vsyncpa [#allocation7], 0 }
   0x2   :  { %9 = vsyncpa [#allocation5], 0  ;;  %s272_s9 = smov [#allocation3]   ;;  %s200_s13 = scalar_lea.hbm %s344_s0, 256 }
   0x3   :  { %s15_s10 = sshll.u32 %s272_s9, 4  ;;  %p201_p0 = scmp.ne.s32.totalorder %s344_s0, %s200_s13  ;;  %s16_s10 = int_to_ptr.vmem [resolvable:$true] %s15_s10 }
   0x4   :  { %p204_p1 = scmp.lt.u32.totalorder %s200_s13, %s344_s0 }
   0x6   :  { %p206_p2 = pnand %p204_p1, %p201_p0 }
   0x8   :  { %209 = shalt.err (!%p206_p2)
}
   0x9   :  { %s210_s18 = scalar_lea.vmem %s16_s10, 256  ;;  %p215_p4 = scmp.lt.s32.totalorder %s16_s10, %s16_s10 }
   0xa   :  { %p211_p3 = scmp.ne.s32.totalorder %s16_s10, %s210_s18  ;;  %p216_p5 = scmp.lt.s32.totalorder %s210_s18, %s210_s18 }
   0xc   :  { %p217_p6 = por %p216_p5, %p215_p4 }
   0xe   :  { %p218_p7 = pnand %p217_p6, %p211_p3 }
  0x10   :  { %221 = shalt.err (!%p218_p7)
}
  0x11   :  { %s273_s19 = smov 128   ;;  %s274_s20 = smov 8  }
  0x12   :  { %21 = dma.hbm_to_vmem [thread:$0]  %s344_s0, 256, %s16_s10, [#allocation4], %s273_s19, %s273_s19, %s274_s20  }
  0x13   :  { %s275_s23 = smov [#allocation6]   ;;  %s222_s27 = scalar_lea.hbm %s345_s1, 512 }
  0x14   :  { %s27_s24 = sshll.u32 %s275_s23, 4  ;;  %p223_p8 = scmp.ne.s32.totalorder %s345_s1, %s222_s27  ;;  %s28_s24 = int_to_ptr.vmem [resolvable:$true] %s27_s24 }
  0x15   :  { %p226_p9 = scmp.lt.u32.totalorder %s222_s27, %s345_s1 }
  0x17   :  { %p228_p10 = pnand %p226_p9, %p223_p8 }
  0x19   :  { %231 = shalt.err (!%p228_p10)
}
  0x1a   :  { %s232_s4 = scalar_lea.vmem %s28_s24, 512  ;;  %p237_p12 = scmp.lt.s32.totalorder %s28_s24, %s28_s24 }
  0x1b   :  { %p233_p11 = scmp.ne.s32.totalorder %s28_s24, %s232_s4  ;;  %p238_p13 = scmp.lt.s32.totalorder %s232_s4, %s232_s4 }
  0x1d   :  { %p239_p0 = por %p238_p13, %p237_p12 }
  0x1f   :  { %p240_p1 = pnand %p239_p0, %p233_p11 }
  0x21   :  { %243 = shalt.err (!%p240_p1)
}
  0x22   :  { %33 = dma.hbm_to_vmem [thread:$0]  %s345_s1, 512, %s28_s24, [#allocation7], %s273_s19, %s273_s19, %s274_s20  }
  0x23   :  { %266 = dma.done.wait [#allocation4], 256  }
  0x24   :  { %267 = vsyncadd [#allocation4], 4294967040 }
  0x25   :  { %268 = dma.done.wait [#allocation7], 512  }
  0x26   :  { %269 = vsyncadd [#allocation7], 4294966784  ;;  %vm44_vm0 = vcmask 523264   ;;  %v276_v0 = vmov 0.0   ;;  %vm55_vm1 = vcmask 261120   ;;  %v51_v1 = vld [vmem:[#allocation6] sm:$0xff] }
  0x27   :  { %46 = vst.msk [vmem:[#allocation2 + $0x8] sm:$0xff] %vm44_vm0, %v276_v0  ;;  %45 = vst.msk [vmem:[#allocation2] sm:$0xff] %vm44_vm0, %v276_v0  ;;  %v52_v2 = vld [vmem:[#allocation6 + $0x8] sm:$0xff]  ;;  %v53_v3 = vld [vmem:[#allocation6 + $0x10] sm:$0xff]  ;;  %s277_s1 = smov [#allocation8]  }
  0x28   :  { %v186_v4 = vpack.c.bf16 %v52_v2, %v51_v1  ;;  %v54_v5 = vld [vmem:[#allocation6 + $0x18] sm:$0xff]  ;;  %v49_v6 = vld [vmem:[#allocation3] sm:$0xff]  ;;  %s154_s6 = sshll.u32 %s277_s1, 4  ;;  %s155_s6 = int_to_ptr.vmem [resolvable:$true] %s154_s6 }
  0x29   :  { %v190_v7 = vpack.c.bf16 %v54_v5, %v53_v3  ;;  %183 = vmatprep.mubr.msk.f32.mxu0 %vm55_vm1, %v49_v6  ;;  %v50_v8 = vld [vmem:[#allocation3 + $0x8] sm:$0xff]  ;;  %s244_s7 = scalar_lea.vmem %s155_s6, 256  ;;  %p249_p3 = scmp.lt.s32.totalorder %s155_s6, %s155_s6 }
  0x2a   :  { %187 = vmatprep.subr.bf16.mxu0 %v186_v4  ;;  %p245_p2 = scmp.ne.s32.totalorder %s155_s6, %s244_s7  ;;  %p250_p4 = scmp.lt.s32.totalorder %s244_s7, %s244_s7 }
  0x2b   :  { %189 = vmatpush3.bf16.msra.mxu0 %v186_v4 }
  0x2c   :  { %191 = vmatprep.subr.bf16.mxu0 %v190_v7  ;;  %p251_p5 = por %p250_p4, %p249_p3 }
  0x2e   :  { %v48_v9 = vld [vmem:[#allocation2 + $0x8] sm:$0xff]  ;;  %v47_v10 = vld [vmem:[#allocation2] sm:$0xff]  ;;  %p252_p6 = pnand %p251_p5, %p245_p2 }
  0x2f   :  { %193 = vmatpush3.bf16.msra.mxu0 %v190_v7 }
  0x32   :  { %184 = vmatmul.mubr.msk.f32.vlgmr.msra.gmra.mrb[0].mxu0 %vm55_vm1, %v50_v8 }
 0x105   :  { %v185_v11 = vpop.f32.mrb[0].mxu0 }
 0x106   :  { %v138_v12 = vadd.f32 %v185_v11, %v48_v9  ;;  %v128_v13 = vpop.f32.mrb[1].mxu0 }
 0x107   :  { %v137_v14 = vadd.f32 %v128_v13, %v47_v10 }
 0x108   :  { %141 = vst.msk [vmem:[#allocation2 + $0x8] sm:$0xff] %vm44_vm0, %v138_v12 }
 0x109   :  { %140 = vst.msk [vmem:[#allocation2] sm:$0xff] %vm44_vm0, %v137_v14 }
 0x10f   :  { %v146_v15 = vld [vmem:[#allocation2 + $0x8] sm:$0xff] }
 0x110   :  { %v145_v16 = vld [vmem:[#allocation2] sm:$0xff]  ;;  %148 = vst.msk [vmem:[#allocation8 + $0x8] sm:$0xff] %vm44_vm0, %v146_v15 }
 0x111   :  { %147 = vst.msk [vmem:[#allocation8] sm:$0xff] %vm44_vm0, %v145_v16 }
 0x112   :  { %255 = shalt.err (!%p252_p6)
}
 0x113   :  { %s256_s10 = scalar_lea.hbm %s346_s2, 256 }
 0x114   :  { %p257_p7 = scmp.ne.s32.totalorder %s346_s2, %s256_s10  ;;  %p260_p8 = scmp.lt.u32.totalorder %s256_s10, %s346_s2 }
 0x116   :  { %p262_p9 = pnand %p260_p8, %p257_p7 }
 0x118   :  { %265 = shalt.err (!%p262_p9)
}
 0x119   :  { %160 = dma.vmem_to_hbm [thread:$0]  %s155_s6, 256, %s346_s2, [#allocation5], %s273_s19, %s273_s19, %s274_s20  }
 0x11a   :  { %270 = dma.done.wait [#allocation5], 256  }
 0x11b   :  { %271 = vsyncadd [#allocation5], 4294967040 }
 0x11c   :  { %164 = vsyncpa [#allocation4], 1 }
 0x11d   :  { %165 = vsyncpa [#allocation7], 1 }
 0x11e   :  { %166 = vsyncpa [#allocation5], 1 }

</bundles_post_ra>
